<compile_context>
chip_gen: v7x
topology: tpu7x:2x2x1
jax: 0.10.0
libtpu: 0.0.40
codegen_flags: <defaults>
</compile_context>

<pallas_src>
import jax
import jax.numpy as jnp
from jax.experimental import pallas as pl
from jax.experimental.pallas import tpu as pltpu

_LANE = 128


def _transpose_kernel(x_ref, o_ref):
    # x_ref: (TM, TN) tile of x;  o_ref: (TN, TM) tile of x.T (XLU transpose).
    o_ref[...] = x_ref[...].T


def _pick_tile(dim: int, target: int) -> int:
    """Full extent if it fits, else the largest multiple of 128 <= target."""
    if dim <= target:
        return dim  # full-extent block dim is always legal (any size)
    return max(_LANE, (target // _LANE) * _LANE)


def pallas_t(x, *, target_tile=512):
    """Equivalent of torch.ops.aten.t.default."""
    if x.ndim < 2:
        return x  # aten.t is a no-op for 0-D / 1-D tensors.
    assert x.ndim == 2, "aten.t.default only accepts tensors with ndim <= 2"
    M, N = x.shape

    tm = _pick_tile(M, target_tile)
    tn = _pick_tile(N, target_tile)
    gm = pl.cdiv(M, tm)
    gn = pl.cdiv(N, tn)

    # Inner grid axis (im) advances the output along its contiguous last dim,
    # so the write side of the transpose streams; the read side is strided.
    in_map = lambda jn, im: (im, jn)
    out_map = lambda jn, im: (jn, im)

    if gm * gn >= 3:
        # Only in-kernel work is an XLU transpose, so exposed strided-read DMA
        # latency is the main stall -> 3-deep input buffering hides it.
        in_spec = pl.BlockSpec((tm, tn), in_map, pipeline_mode=pl.Buffered(3))
    else:
        in_spec = pl.BlockSpec((tm, tn), in_map)
    out_spec = pl.BlockSpec((tn, tm), out_map)

    itemsize = jnp.dtype(x.dtype).itemsize
    return pl.pallas_call(
        _transpose_kernel,
        out_shape=jax.ShapeDtypeStruct((N, M), x.dtype),
        grid=(gn, gm),
        in_specs=[in_spec],
        out_specs=out_spec,
        compiler_params=pltpu.CompilerParams(
            dimension_semantics=("parallel", "parallel")
        ),
        cost_estimate=pl.CostEstimate(
            flops=0, transcendentals=0, bytes_accessed=2 * M * N * itemsize
        ),
    )(x)


if __name__ == "__main__":
    key = jax.random.PRNGKey(0)

    cases = [
        ((8, 32), jnp.float32),       # tiny: single full-extent tile
        ((520, 260), jnp.float32),    # ragged along M -> edge-block masking
        ((384, 640), jnp.bfloat16),   # packed dtype, ragged along N
        ((1040, 640), jnp.float32),   # multi-tile both axes + Buffered(3) path
    ]
    for shape, dtype in cases:
        key, sub = jax.random.split(key)
        x = jax.random.normal(sub, shape, dtype=jnp.float32).astype(dtype)
        y = pallas_t(x)
        jax.block_until_ready(y)
        assert y.shape == (shape[1], shape[0])
        assert jnp.array_equal(y, x.T), f"mismatch for shape={shape} dtype={dtype}"

    print("KERNEL_OK")
</pallas_src>

<mosaic_0001>
module attributes {stable_mosaic.version = 11 : i64} {
  func.func @_transpose_kernel(%arg0: i32, %arg1: i32, %arg2: memref<8x32xf32, #tpu.memory_space<vmem>>, %arg3: memref<32x8xf32, #tpu.memory_space<vmem>>) attributes {dimension_semantics = [#tpu.dimension_semantics<parallel>, #tpu.dimension_semantics<parallel>], iteration_bounds = array<i64: 1, 1>, scalar_prefetch = 0 : i64, scratch_operands = 0 : i64, tpu.core_type = #tpu.core_type<tc>, window_params = [{transform_indices = @transform_0, window_bounds = array<i64: 8, 32>}, {transform_indices = @transform_1, window_bounds = array<i64: 32, 8>}]} {
    %c0 = arith.constant 0 : index
    %c0_0 = arith.constant 0 : index
    %0 = vector.load %arg2[%c0, %c0_0] : memref<8x32xf32, #tpu.memory_space<vmem>>, vector<8x32xf32>
    %1 = tpu.transpose %0, [1, 0] : vector<8x32xf32> -> vector<32x8xf32>
    %c0_1 = arith.constant 0 : index
    %c0_2 = arith.constant 0 : index
    %2 = vector.load %arg3[%c0_1, %c0_2] : memref<32x8xf32, #tpu.memory_space<vmem>>, vector<32x8xf32>
    tpu.vector_store %arg3[%c0_1, %c0_2], %1 {strides = array<i32>} : memref<32x8xf32, #tpu.memory_space<vmem>>, vector<32x8xf32>,
    return
  }
  func.func @transform_0(%arg0: i32, %arg1: i32) -> (i32, i32) {
    %c0_i32 = arith.constant 0 : i32
    return %arg1, %arg0 : i32, i32
  }
  func.func @transform_1(%arg0: i32, %arg1: i32) -> (i32, i32) {
    %c0_i32 = arith.constant 0 : i32
    return %arg0, %arg1 : i32, i32
  }
}

</mosaic_0001>

<bundles_post_ra>
// kernel: tpu_custom_call.1
= control target key start
LH: loop header
LB: loop body
LE: loop exit
PB: predicated region body
PF: predicated region fallthrough
CT: control target
= control target key end

     0   :  { %6 = vsyncpa [#allocation3], 0  ;;  %s89_s6 = smov [#allocation2]   ;;  %s124_s0 = inlined_call_operand.hbm [shape: f32[8,32], index: 0, kind: input, shape index: {}]   ;;  %s125_s1 = inlined_call_operand.vmem [shape: f32[32,8], index: 1, kind: output, shape index: {}]  }
   0x1   :  { %s13_s7 = sshll.u32 %s89_s6, 4  ;;  %s65_s10 = scalar_lea.hbm %s124_s0, 128  ;;  %s14_s7 = int_to_ptr.vmem [resolvable:$true] %s13_s7 }
   0x2   :  { %p66_p0 = scmp.ne.s32.totalorder %s124_s0, %s65_s10  ;;  %p69_p1 = scmp.lt.u32.totalorder %s65_s10, %s124_s0 }
   0x4   :  { %p71_p2 = pnand %p69_p1, %p66_p0 }
   0x6   :  { %74 = shalt.err (!%p71_p2)
}
   0x7   :  { %s75_s15 = scalar_lea.vmem %s14_s7, 128  ;;  %p80_p4 = scmp.lt.s32.totalorder %s14_s7, %s14_s7 }
   0x8   :  { %p76_p3 = scmp.ne.s32.totalorder %s14_s7, %s75_s15  ;;  %p81_p5 = scmp.lt.s32.totalorder %s75_s15, %s75_s15 }
   0xa   :  { %p82_p6 = por %p81_p5, %p80_p4 }
   0xc   :  { %p83_p7 = pnand %p82_p6, %p76_p3 }
   0xe   :  { %86 = shalt.err (!%p83_p7)
}
   0xf   :  { %16 = dma.hbm_to_vmem [thread:$0]  %s124_s0, 128, %s14_s7, [#allocation3]  }
  0x10   :  { %87 = dma.done.wait [#allocation3], 128  }
  0x11   :  { %88 = vsyncadd [#allocation3], 4294967168  ;;  %v20_v0 = vld [vmem:[#allocation2] sm:$0xff]  ;;  %vm53_vm0 = vcmask 64512  }
  0x12   :  { %21 = vxpose.xlu0.b32.start.end [1/1] (short) (narrow) %v20_v0, 32 }
  0x92   :  { %v37_v1 = vpop.trf.xlu0 }
  0x93   :  { %54 = vst.msk [vmem:[%s125_s1] sm:$0xff] %vm53_vm0, %v37_v1 }
  0x96   :  { %v38_v2 = vpop.trf.xlu0 }
  0x97   :  { %55 = vst.msk [vmem:[%s125_s1 + $0x8] sm:$0xff] %vm53_vm0, %v38_v2 }
  0x9a   :  { %v39_v3 = vpop.trf.xlu0 }
  0x9b   :  { %56 = vst.msk [vmem:[%s125_s1 + $0x10] sm:$0xff] %vm53_vm0, %v39_v3 }
  0x9e   :  { %v40_v4 = vpop.trf.xlu0 }
  0x9f   :  { %57 = vst.msk [vmem:[%s125_s1 + $0x18] sm:$0xff] %vm53_vm0, %v40_v4 }
  0xa0   :  { %62 = vsyncpa [#allocation3], 1 }

</bundles_post_ra>
